<compile_context>
chip_gen: v7x
topology: tpu7x:2x2x1
jax: 0.10.0
libtpu: 0.0.40
codegen_flags: <defaults>
</compile_context>

<pallas_src>
import functools

import jax
import jax.numpy as jnp
from jax import lax
from jax.experimental import pallas as pl
from jax.experimental.pallas import tpu as pltpu


# ----------------------------------------------------------------------------
# Kernel 1: fused masked top-k means for all four feature streams, one batch
# sample per grid step.
#   w_ref    : (2, T)    f32 one-hot weights (row 0 = normal, row 1 = abnormal)
#   invk_ref : (1, 2)    f32 [1/k_nor, 1/k_abn]
#   *_ref    : (T, D)    feature streams in their native dtype
#   out_ref  : (1, 1, 4D) f32 packed [poin_nor | lore_nor | poin_abn | lore_abn]
# ----------------------------------------------------------------------------
def _fused_masked_mean_kernel(w_ref, invk_ref, pn_ref, ln_ref, pa_ref, la_ref,
                              out_ref):
    dt = pn_ref.dtype
    w_nor = w_ref[0:1, :].astype(dt)          # (1, T) one-hot -> exact in bf16 too
    w_abn = w_ref[1:2, :].astype(dt)
    inv = invk_ref[...]                       # (1, 2) f32
    inv_nor = inv[:, 0:1]                     # (1, 1)
    inv_abn = inv[:, 1:2]

    # Four (1,T)x(T,D) MXU contractions over T with f32 accumulation.  Each
    # weight row only multiplies its own streams -> no discarded half.
    m_pn = jnp.dot(w_nor, pn_ref[...], preferred_element_type=jnp.float32)
    m_ln = jnp.dot(w_nor, ln_ref[...], preferred_element_type=jnp.float32)
    m_pa = jnp.dot(w_abn, pa_ref[...], preferred_element_type=jnp.float32)
    m_la = jnp.dot(w_abn, la_ref[...], preferred_element_type=jnp.float32)

    # Exact mean: divide-by-k in f32 on the tiny result (VPU, essentially free).
    res = jnp.concatenate([m_pn * inv_nor, m_ln * inv_nor,
                           m_pa * inv_abn, m_la * inv_abn], axis=-1)   # (1, 4D)
    out_ref[...] = res.reshape(out_ref.shape)


def fused_masked_means(weights, inv_k, poin_nor, lore_nor, poin_abn, lore_abn):
    """weights: (B,2,T) f32 one-hot; inv_k: (B,1,2) f32; feats: (B,T,D)."""
    B, _, T = weights.shape
    D = poin_nor.shape[-1]
    four_d = 4 * D

    feat_spec = pl.BlockSpec((pl.Squeezed(), T, D), lambda b: (b, 0, 0))
    per_step_bytes = (4 * T * D * poin_nor.dtype.itemsize      # 4 feature tiles
                      + 2 * T * 4 + 2 * 4 + four_d * 4)        # weights+invk+out
    # Auto-pipeline double-buffers each input; cap at 32 MiB so the same config
    # stays VMEM-safe on v7x (64 MiB physical).  Raise (and/or enlarge the
    # B-block) on v5e/v6e's 128 MiB parts if the per-step tile is ever grown.
    vmem_limit = int(min(max(4 * per_step_bytes, 4 << 20), 32 << 20))

    out = pl.pallas_call(
        _fused_masked_mean_kernel,
        out_shape=jax.ShapeDtypeStruct((B, 1, four_d), jnp.float32),
        grid_spec=pltpu.PrefetchScalarGridSpec(
            num_scalar_prefetch=0,
            grid=(B,),
            in_specs=[
                pl.BlockSpec((pl.Squeezed(), 2, T), lambda b: (b, 0, 0)),
                pl.BlockSpec((pl.Squeezed(), 1, 2), lambda b: (b, 0, 0)),
                feat_spec, feat_spec, feat_spec, feat_spec,
            ],
            out_specs=pl.BlockSpec((1, 1, four_d), lambda b: (b, 0, 0)),
        ),
        compiler_params=pltpu.CompilerParams(
            dimension_semantics=("parallel",),
            vmem_limit_bytes=vmem_limit),
    )(weights, inv_k, poin_nor, lore_nor, poin_abn, lore_abn)
    return out.reshape(B, four_d)


# ----------------------------------------------------------------------------
# Kernel 2: InfoNCE loss with unpaired negatives (temperature = 0.1,
# reduction = 'mean'), identical to info_nce.InfoNCE(negative_mode='unpaired').
# ----------------------------------------------------------------------------
def _infonce_kernel(q_ref, p_ref, n_ref, o_ref, *, mxu_dtype):
    eps = 1e-12
    inv_t = 10.0                                      # 1 / temperature

    def l2norm(x):
        ss = jnp.sum(x * x, axis=-1, keepdims=True)
        # x * rsqrt(max(ss, eps^2)) == x / max(||x||, eps)  (F.normalize); EUP.
        return x * lax.rsqrt(jnp.maximum(ss, eps * eps))

    q = l2norm(q_ref[...].astype(jnp.float32))        # (N, D) queries   (abn_rep1)
    p = l2norm(p_ref[...].astype(jnp.float32))        # (N, D) positives (abn_rep2)
    n = l2norm(n_ref[...].astype(jnp.float32))        # (M, D) negatives (nor_rep)

    pos = jnp.sum(q * p, axis=-1, keepdims=True) * inv_t                 # (N, 1)
    # Negative logits on the MXU; bf16 operands when upstream features are
    # bf16 (v6e/v7x bf16-native MXU), f32 accumulation either way.
    neg = lax.dot_general(q.astype(mxu_dtype), n.astype(mxu_dtype),
                          (((1,), (1,)), ((), ())),
                          preferred_element_type=jnp.float32) * inv_t    # (N, M)

    # cross_entropy(logits=[pos, neg], labels=0) == logsumexp(logits) - pos
    mx = jnp.maximum(pos, jnp.max(neg, axis=-1, keepdims=True))          # (N, 1)
    denom = jnp.exp(pos - mx) + jnp.sum(jnp.exp(neg - mx), axis=-1, keepdims=True)
    loss_i = mx + jnp.log(denom) - pos                                   # (N, 1)

    o_ref[...] = jnp.sum(loss_i, axis=0, keepdims=True) * (1.0 / loss_i.shape[0])


def infonce_unpaired(query, positive, negatives, *, mxu_dtype=jnp.float32):
    N, D = query.shape
    M = negatives.shape[0]
    kernel = functools.partial(_infonce_kernel, mxu_dtype=mxu_dtype)
    out = pl.pallas_call(
        kernel,
        out_shape=jax.ShapeDtypeStruct((1, 1), jnp.float32),
        in_specs=[pl.BlockSpec((N, D), lambda: (0, 0)),
                  pl.BlockSpec((N, D), lambda: (0, 0)),
                  pl.BlockSpec((M, D), lambda: (0, 0))],
        out_specs=pl.BlockSpec((1, 1), lambda: (0, 0)),
    )(query, positive, negatives)
    return out[0, 0]


# ----------------------------------------------------------------------------
# Host-side glue.
# ----------------------------------------------------------------------------
def _topk_onehot(scores, lengths, T):
    """Batched one-hot top-k selection weights.

    Returns (B, T) f32 {0,1} weights marking the top-k_i positions of
    scores[i, :lengths[i]] (k_i = lengths[i]//16 + 1), the python list of k_i,
    and k_i as an f32 array.  sigmoid is monotonic, so top-k on raw scores
    selects the same indices as the PyTorch top-k on sigmoid(score).
    """
    # TODO(synk): top-k (sorting) has no clean Pallas TPU equivalent; done with
    # a single batched jax.lax.top_k over length-masked scores.
    ks = [int(l) // 16 + 1 for l in lengths]
    kmax = max(ks)
    len_arr = jnp.asarray([int(l) for l in lengths], jnp.int32)      # (B,)
    k_arr = jnp.asarray(ks, jnp.int32)                               # (B,)
    pos = jnp.arange(T, dtype=jnp.int32)
    valid = pos[None, :] < len_arr[:, None]                          # (B, T)
    masked = jnp.where(valid, scores.astype(jnp.float32), -jnp.inf)
    _, top_idx = lax.top_k(masked, kmax)                             # (B, kmax)
    keep = jnp.arange(kmax, dtype=jnp.int32)[None, :] < k_arr[:, None]
    onehot = (top_idx[:, :, None] == pos[None, None, :]) & keep[:, :, None]
    sel = jnp.sum(onehot.astype(jnp.float32), axis=1)                # (B, T) {0,1}
    return sel, ks, k_arr.astype(jnp.float32)


def hcil_forward(abn_score, nor_score, poin_abn_feat, poin_nor_feat,
                 lore_abn_feat, lore_nor_feat, seq_len, batch_size,
                 sample_key):
    B = batch_size
    T = abn_score.shape[1]
    D = poin_abn_feat.shape[-1]
    nor_seq_len = [int(v) for v in seq_len[:B]]
    abn_seq_len = [int(v) for v in seq_len[B:]]
    # TODO(synk): k_i / gather lists / rep-row counts are trace-time Python
    # ints (as in the torch reference); a new seq_len combination recompiles.
    # Padding to a static max count with a masked InfoNCE would remove that.

    nor_w, k_nor, k_nor_f = _topk_onehot(nor_score, nor_seq_len, T)
    abn_w, k_abn, k_abn_f = _topk_onehot(abn_score, abn_seq_len, T)
    weights = jnp.stack([nor_w, abn_w], axis=1)                      # (B, 2, T)
    inv_k = jnp.stack([1.0 / k_nor_f, 1.0 / k_abn_f], axis=-1).reshape(B, 1, 2)

    means = fused_masked_means(weights, inv_k,
                               poin_nor_feat, lore_nor_feat,
                               poin_abn_feat, lore_abn_feat)         # (B, 4D) f32
    poin_nor_mean = means[:, 0 * D:1 * D]
    lore_nor_mean = means[:, 1 * D:2 * D]
    poin_abn_mean = means[:, 2 * D:3 * D]
    lore_abn_mean = means[:, 3 * D:4 * D]

    # Rebuild the repeated representation rows with one static gather per
    # stream (same ordering as the torch per-sample expand + cat).  Kept
    # materialized so the random-subsample step below keeps its semantics.
    # TODO(synk): optional algorithmic dedup (B x 2B logit matrix + multiplicity
    # weights in the InfoNCE kernel) would remove these repeated rows entirely.
    nor_idx, abn_idx = [], []
    for i in range(B):
        nor_idx += [i] * k_nor[i] + [B + i] * k_nor[i]   # poin rows, then lore rows
        abn_idx += [i] * k_abn[i]
    nor_src = jnp.concatenate([poin_nor_mean, lore_nor_mean], axis=0)    # (2B, D)
    nor_rep = nor_src[jnp.asarray(nor_idx, jnp.int32)]
    abn_gather = jnp.asarray(abn_idx, jnp.int32)
    abn_rep1 = poin_abn_mean[abn_gather]
    abn_rep2 = lore_abn_mean[abn_gather]

    n_abn, n_nor = abn_rep1.shape[0], nor_rep.shape[0]
    if n_abn == 0 or n_nor == 0:
        return jnp.float32(0.0)

    # TODO(synk): deterministic stand-in for python random.sample(range(max_len), min_len).
    min_len, max_len = min(n_abn, n_nor), max(n_abn, n_nor)
    idx = jax.random.permutation(sample_key, max_len)[:min_len]
    if n_abn > n_nor:
        abn_rep1 = abn_rep1[idx]
        abn_rep2 = abn_rep2[idx]
    else:
        nor_rep = nor_rep[idx]

    # bf16 MXU operands for the negatives matmul only when upstream features
    # are bf16; exact f32 path otherwise (matches the torch f32 reference).
    mxu_dtype = (jnp.bfloat16 if poin_abn_feat.dtype == jnp.bfloat16
                 else jnp.float32)
    return infonce_unpaired(abn_rep1, abn_rep2, nor_rep, mxu_dtype=mxu_dtype)


if __name__ == "__main__":
    key = jax.random.PRNGKey(0)
    B, T, D = 2, 16, 32
    ks = jax.random.split(key, 7)

    abn_score = jax.random.normal(ks[0], (B, T), jnp.float32)
    nor_score = jax.random.normal(ks[1], (B, T), jnp.float32)
    poin_abn_feat = jax.random.normal(ks[2], (B, T, D), jnp.float32)
    poin_nor_feat = jax.random.normal(ks[3], (B, T, D), jnp.float32)
    lore_abn_feat = jax.random.normal(ks[4], (B, T, D), jnp.float32)
    lore_nor_feat = jax.random.normal(ks[5], (B, T, D), jnp.float32)
    seq_len = [T] * (2 * B)  # first B: normal lengths, last B: abnormal lengths

    loss = hcil_forward(abn_score, nor_score, poin_abn_feat, poin_nor_feat,
                        lore_abn_feat, lore_nor_feat, seq_len, B,
                        sample_key=ks[6])
    jax.block_until_ready(loss)
    print("KERNEL_OK")
</pallas_src>

<mosaic_0001>
module attributes {stable_mosaic.version = 11 : i64} {
  func.func @_fused_masked_mean_kernel(%arg0: i32, %arg1: memref<1x2x16xf32, #tpu.memory_space<vmem>>, %arg2: memref<1x1x2xf32, #tpu.memory_space<vmem>>, %arg3: memref<1x16x32xf32, #tpu.memory_space<vmem>>, %arg4: memref<1x16x32xf32, #tpu.memory_space<vmem>>, %arg5: memref<1x16x32xf32, #tpu.memory_space<vmem>>, %arg6: memref<1x16x32xf32, #tpu.memory_space<vmem>>, %arg7: memref<1x1x128xf32, #tpu.memory_space<vmem>>) attributes {dimension_semantics = [#tpu.dimension_semantics<parallel>], iteration_bounds = array<i64: 2>, scalar_prefetch = 0 : i64, scratch_operands = 0 : i64, tpu.core_type = #tpu.core_type<tc>, window_params = [{transform_indices = @transform_0, window_bounds = array<i64: 1, 2, 16>}, {transform_indices = @transform_1, window_bounds = array<i64: 1, 1, 2>}, {transform_indices = @transform_2, window_bounds = array<i64: 1, 16, 32>}, {transform_indices = @transform_3, window_bounds = array<i64: 1, 16, 32>}, {transform_indices = @transform_4, window_bounds = array<i64: 1, 16, 32>}, {transform_indices = @transform_5, window_bounds = array<i64: 1, 16, 32>}, {transform_indices = @transform_6, window_bounds = array<i64: 1, 1, 128>}]} {
    %c0 = arith.constant 0 : index
    %c0_0 = arith.constant 0 : index
    %c0_1 = arith.constant 0 : index
    %0 = vector.load %arg1[%c0, %c0_0, %c0_1] : memref<1x2x16xf32, #tpu.memory_space<vmem>>, vector<1x1x16xf32>
    %1 = vector.shape_cast %0 : vector<1x1x16xf32> to vector<1x16xf32>
    %c0_2 = arith.constant 0 : index
    %c1 = arith.constant 1 : index
    %c0_3 = arith.constant 0 : index
    %2 = vector.load %arg1[%c0_2, %c1, %c0_3] : memref<1x2x16xf32, #tpu.memory_space<vmem>>, vector<1x1x16xf32>
    %3 = vector.shape_cast %2 : vector<1x1x16xf32> to vector<1x16xf32>
    %c0_4 = arith.constant 0 : index
    %c0_5 = arith.constant 0 : index
    %c0_6 = arith.constant 0 : index
    %4 = vector.load %arg2[%c0_4, %c0_5, %c0_6] : memref<1x1x2xf32, #tpu.memory_space<vmem>>, vector<1x1x2xf32>
    %5 = vector.shape_cast %4 : vector<1x1x2xf32> to vector<1x2xf32>
    %6 = vector.extract_strided_slice %5 {offsets = [0, 0], sizes = [1, 1], strides = [1, 1]} : vector<1x2xf32> to vector<1x1xf32>
    %7 = vector.extract_strided_slice %5 {offsets = [0, 1], sizes = [1, 1], strides = [1, 1]} : vector<1x2xf32> to vector<1x1xf32>
    %c0_7 = arith.constant 0 : index
    %c0_8 = arith.constant 0 : index
    %c0_9 = arith.constant 0 : index
    %8 = vector.load %arg3[%c0_7, %c0_8, %c0_9] : memref<1x16x32xf32, #tpu.memory_space<vmem>>, vector<1x16x32xf32>
    %9 = vector.shape_cast %8 : vector<1x16x32xf32> to vector<16x32xf32>
    %cst = arith.constant dense<0.000000e+00> : vector<1x32xf32>
    %10 = tpu.matmul %1, %9, %cst {dimension_numbers = #tpu.dot_dimension_numbers<[1], [0], [0], [1], [0, 0, 1, 1], [], []>} : vector<1x16xf32>, vector<16x32xf32>, vector<1x32xf32> -> vector<1x32xf32>
    %c0_10 = arith.constant 0 : index
    %c0_11 = arith.constant 0 : index
    %c0_12 = arith.constant 0 : index
    %11 = vector.load %arg4[%c0_10, %c0_11, %c0_12] : memref<1x16x32xf32, #tpu.memory_space<vmem>>, vector<1x16x32xf32>
    %12 = vector.shape_cast %11 : vector<1x16x32xf32> to vector<16x32xf32>
    %cst_13 = arith.constant dense<0.000000e+00> : vector<1x32xf32>
    %13 = tpu.matmul %1, %12, %cst_13 {dimension_numbers = #tpu.dot_dimension_numbers<[1], [0], [0], [1], [0, 0, 1, 1], [], []>} : vector<1x16xf32>, vector<16x32xf32>, vector<1x32xf32> -> vector<1x32xf32>
    %c0_14 = arith.constant 0 : index
    %c0_15 = arith.constant 0 : index
    %c0_16 = arith.constant 0 : index
    %14 = vector.load %arg5[%c0_14, %c0_15, %c0_16] : memref<1x16x32xf32, #tpu.memory_space<vmem>>, vector<1x16x32xf32>
    %15 = vector.shape_cast %14 : vector<1x16x32xf32> to vector<16x32xf32>
    %cst_17 = arith.constant dense<0.000000e+00> : vector<1x32xf32>
    %16 = tpu.matmul %3, %15, %cst_17 {dimension_numbers = #tpu.dot_dimension_numbers<[1], [0], [0], [1], [0, 0, 1, 1], [], []>} : vector<1x16xf32>, vector<16x32xf32>, vector<1x32xf32> -> vector<1x32xf32>
    %c0_18 = arith.constant 0 : index
    %c0_19 = arith.constant 0 : index
    %c0_20 = arith.constant 0 : index
    %17 = vector.load %arg6[%c0_18, %c0_19, %c0_20] : memref<1x16x32xf32, #tpu.memory_space<vmem>>, vector<1x16x32xf32>
    %18 = vector.shape_cast %17 : vector<1x16x32xf32> to vector<16x32xf32>
    %cst_21 = arith.constant dense<0.000000e+00> : vector<1x32xf32>
    %19 = tpu.matmul %3, %18, %cst_21 {dimension_numbers = #tpu.dot_dimension_numbers<[1], [0], [0], [1], [0, 0, 1, 1], [], []>} : vector<1x16xf32>, vector<16x32xf32>, vector<1x32xf32> -> vector<1x32xf32>
    %20 = vector.broadcast %6 : vector<1x1xf32> to vector<1x32xf32>
    %21 = arith.mulf %10, %20 : vector<1x32xf32>
    %22 = vector.broadcast %6 : vector<1x1xf32> to vector<1x32xf32>
    %23 = arith.mulf %13, %22 : vector<1x32xf32>
    %24 = vector.broadcast %7 : vector<1x1xf32> to vector<1x32xf32>
    %25 = arith.mulf %16, %24 : vector<1x32xf32>
    %26 = vector.broadcast %7 : vector<1x1xf32> to vector<1x32xf32>
    %27 = arith.mulf %19, %26 : vector<1x32xf32>
    %28 = tpu.concatenate %21, %23, %25, %27 in 1 : vector<1x32xf32>, vector<1x32xf32>, vector<1x32xf32>, vector<1x32xf32> -> vector<1x128xf32>
    %29 = vector.shape_cast %28 : vector<1x128xf32> to vector<1x1x128xf32>
    %c0_22 = arith.constant 0 : index
    %c0_23 = arith.constant 0 : index
    %c0_24 = arith.constant 0 : index
    %30 = vector.load %arg7[%c0_22, %c0_23, %c0_24] : memref<1x1x128xf32, #tpu.memory_space<vmem>>, vector<1x1x128xf32>
    tpu.vector_store %arg7[%c0_22, %c0_23, %c0_24], %29 {strides = array<i32>} : memref<1x1x128xf32, #tpu.memory_space<vmem>>, vector<1x1x128xf32>,
    return
  }
  func.func @transform_0(%arg0: i32) -> (i32, i32, i32) {
    %c0_i32 = arith.constant 0 : i32
    %c0_i32_0 = arith.constant 0 : i32
    %c0_i32_1 = arith.constant 0 : i32
    return %arg0, %c0_i32, %c0_i32_0 : i32, i32, i32
  }
  func.func @transform_1(%arg0: i32) -> (i32, i32, i32) {
    %c0_i32 = arith.constant 0 : i32
    %c0_i32_0 = arith.constant 0 : i32
    %c0_i32_1 = arith.constant 0 : i32
    return %arg0, %c0_i32, %c0_i32_0 : i32, i32, i32
  }
  func.func @transform_2(%arg0: i32) -> (i32, i32, i32) {
    %c0_i32 = arith.constant 0 : i32
    %c0_i32_0 = arith.constant 0 : i32
    %c0_i32_1 = arith.constant 0 : i32
    return %arg0, %c0_i32, %c0_i32_0 : i32, i32, i32
  }
  func.func @transform_3(%arg0: i32) -> (i32, i32, i32) {
    %c0_i32 = arith.constant 0 : i32
    %c0_i32_0 = arith.constant 0 : i32
    %c0_i32_1 = arith.constant 0 : i32
    return %arg0, %c0_i32, %c0_i32_0 : i32, i32, i32
  }
  func.func @transform_4(%arg0: i32) -> (i32, i32, i32) {
    %c0_i32 = arith.constant 0 : i32
    %c0_i32_0 = arith.constant 0 : i32
    %c0_i32_1 = arith.constant 0 : i32
    return %arg0, %c0_i32, %c0_i32_0 : i32, i32, i32
  }
  func.func @transform_5(%arg0: i32) -> (i32, i32, i32) {
    %c0_i32 = arith.constant 0 : i32
    %c0_i32_0 = arith.constant 0 : i32
    %c0_i32_1 = arith.constant 0 : i32
    return %arg0, %c0_i32, %c0_i32_0 : i32, i32, i32
  }
  func.func @transform_6(%arg0: i32) -> (i32, i32, i32) {
    %c0_i32 = arith.constant 0 : i32
    %c0_i32_0 = arith.constant 0 : i32
    %c0_i32_1 = arith.constant 0 : i32
    return %arg0, %c0_i32, %c0_i32_0 : i32, i32, i32
  }
}

</mosaic_0001>

<bundles_post_ra>
// kernel: tpu_custom_call.1
= control target key start
LH: loop header
LB: loop body
LE: loop exit
PB: predicated region body
PF: predicated region fallthrough
CT: control target
= control target key end

     0   :  { %s1737_s0 = inlined_call_operand.hbm [shape: f32[2,2,16], index: 0, kind: input, shape index: {}]   ;;  %s1738_s1 = inlined_call_operand.vmem [shape: f32[2,1,2], index: 1, kind: input, shape index: {}]   ;;  %s1739_s2 = inlined_call_operand.hbm [shape: f32[2,16,32], index: 2, kind: input, shape index: {}]   ;;  %s1740_s3 = inlined_call_operand.hbm [shape: f32[2,16,32], index: 3, kind: input, shape index: {}]   ;;  %s1741_s4 = inlined_call_operand.hbm [shape: f32[2,16,32], index: 4, kind: input, shape index: {}]   ;;  %s1742_s5 = inlined_call_operand.hbm [shape: f32[2,16,32], index: 5, kind: input, shape index: {}]   ;;  %s1743_s6 = inlined_call_operand.hbm [shape: f32[2,1,128], index: 6, kind: output, shape index: {}]  }
   0x1   :  { %1758 = sst [smem:[#allocation22_spill]] %s1739_s2 }
   0x2   :  { %1759 = sst [smem:[#allocation23_spill]] %s1741_s4 }
   0x3   :  { %1760 = sst [smem:[#allocation24_spill]] %s1743_s6 }
   0x4   :  { %11 = vsyncpa [#allocation3], 0 }
   0x5   :  { %13 = vsyncpa [#allocation3 + $0x1], 0 }
   0x6   :  { %14 = vsyncpa [#allocation6], 0 }
   0x7   :  { %16 = vsyncpa [#allocation6 + $0x1], 0 }
   0x8   :  { %17 = vsyncpa [#allocation9], 0 }
   0x9   :  { %19 = vsyncpa [#allocation9 + $0x1], 0 }
   0xa   :  { %20 = vsyncpa [#allocation4], 0 }
   0xb   :  { %22 = vsyncpa [#allocation4 + $0x1], 0  ;;  %s1387_s21 = smov 0   ;;  %s1389_s22 = smov 0  }
   0xc   :  { %s1391_s23 = smov 0   ;;  %s1393_s24 = smov 0  }
   0xd LB: > { %1761 = sst [smem:[#allocation16_spill]] %s1322_s21  ;;  %s1408_s25 = sadd.s32 4294967295, %s1334_s24   ;;  %s1334_s24 = sphi %s1393_s24, %s1788_s24   ;;  %s1330_s23 = sphi %s1391_s23, %s1790_s23   ;;  %s1326_s22 = sphi %s1389_s22, %s1792_s22   ;;  %s1322_s21 = sphi %s1387_s21, %s1791_s21  }
   0xe   : > { %1762 = sst [smem:[#allocation17_spill]] %s1330_s23  ;;  %s946_s26 = sadd.s32 4294967294, %s1334_s24  }
   0xf   : > { %1763 = sst [smem:[#allocation18_spill]] %s1334_s24  ;;  %s1412_s27 = sadd.s32 1, %s1334_s24  }
  0x10   : > { %1764 = sst [smem:[#allocation19_spill]] %s1412_s27  ;;  %s35_s28 = sadd.s32 1, %s1330_s23 }
  0x11   : > { %s32_s29 = ssub.s32 %s1334_s24, %s1412_s27  ;;  %p42_p0 = scmp.ne.s32.totalorder %s1330_s23, %s1326_s22 }
  0x12   : > { %p33_p1 = scmp.eq.s32.totalorder %s32_s29, 0  ;;  %p43_p2 = scmp.eq.s32.totalorder %s1334_s24, 0 }
  0x13   : > { %p48_p3 = scmp.ne.s32.totalorder %s1326_s22, %s1322_s21  ;;  %p49_p4 = scmp.eq.s32.totalorder %s1408_s25, 0 }
  0x14   : > { %s1424_s30 = scalar_select %p33_p1, %s1330_s23, %s35_s28  }
  0x15   : > { %p44_p5 = por %p43_p2, %p42_p0  ;;  %p1426_p6 = por %p49_p4, %p48_p3 }
  0x16   : > { %1765 = sst [smem:[#allocation20_spill]] %s1424_s30  ;;  %p202_p7 = scmp.eq.s32.totalorder %s1408_s25, 1 }
  0x17   : > { %s1766_s7 = scalar_select %p1426_p6, 1, 0 }
  0x18   : > { %p208_p8 = scmp.eq.s32.totalorder %s946_s26, 1  ;;  %p1064_p10 = scmp.lt.s32.totalorder %s1334_s24, 2 }
  0x19   : > { %p1433_p11 = por %p202_p7, %p42_p0  ;;  %s1442_s10 = sand.u32 1, %s1330_s23  }
  0x1a   : > { %p1437_p12 = por %p208_p8, %p48_p3  ;;  %p1444_p13 = pnand %p1064_p10, %p44_p5 }
  0x1b   : > { %s1767_s8 = scalar_select %p1433_p11, 1, 0 }
  0x1c   : > { %s1768_s9 = scalar_select %p1437_p12, 1, 0 }
  0x1d   : > { %s1744_s12 = sand.u32 1, %s1334_s24   ;;  %s1450_s13 = sshll.u32 %s1442_s10, 4 }
  0x1e   : > { %1769 = sst [smem:[#allocation21_spill]] %s1768_s9  ;;  %s1453_s14 = sshll.u32 %s1334_s24, 8 }
  0x1f   : > { %s1771_s2 = sld [smem:[#allocation22_spill]]  ;;  %s256_s18 = scalar_lea.vmem [#allocation5], %s1450_s13 }
  0x20   : > { %s263_s19 = sshll.u32 %s256_s18, 4  ;;  %s1467_s20 = scalar_lea.sflag [#allocation6], %s1744_s12  ;;  %s1462_s19 = int_to_ptr.vmem [resolvable:$true] %s263_s19 }
  0x21   : > { %p1473_p2 = pneg %p1444_p13 }
  0x25   : > { %s1459_s17 = scalar_lea.hbm %s1771_s2, %s1453_s14  ;;  %s1115_s16 = scalar_lea.hbm %s1771_s2, 512 }
  0x26   : > { %s1110_s26 = scalar_lea.hbm %s1459_s17, 256  ;;  %p1116_p5 = scmp.lt.u32.totalorder %s1459_s17, %s1771_s2 }
  0x27   : > { %p1111_p1 = scmp.ne.s32.totalorder %s1459_s17, %s1110_s26  ;;  %p1117_p7 = scmp.lt.u32.totalorder %s1115_s16, %s1110_s26 }
  0x28   : > { %p1119_p10 = scmp.lt.u32.totalorder %s1110_s26, %s1459_s17 }
  0x29   : > { %p1113_p3 = pnand %p1473_p2, %p1111_p1  ;;  %p1118_p8 = por %p1117_p7, %p1116_p5 }
  0x2b   : > { %p1114_p4 = pneg %p1113_p3  ;;  %p1120_p9 = por %p1119_p10, %p1118_p8 }
  0x2d   : > { %p1121_p0 = pnand %p1120_p9, %p1114_p4 }
  0x2f   : > { %1124 = shalt.err (!%p1121_p0)
}
  0x30   : > { %s1125_s12 = scalar_lea.vmem %s1462_s19, 256  ;;  %s1336_s29 = smov [#allocation5]  }
  0x31   : > { %p1126_p1 = scmp.ne.s32.totalorder %s1462_s19, %s1125_s12  ;;  %s1130_s15 = sshll.u32 %s1336_s29, 4  ;;  %s1131_s15 = int_to_ptr.vmem [resolvable:$false] %s1130_s15 }
  0x32   : > { %s1132_s30 = scalar_lea.vmem %s1131_s15, 512  ;;  %p1133_p11 = scmp.lt.s32.totalorder %s1462_s19, %s1131_s15 }
  0x33   : > { %p1128_p3 = pnand %p1126_p1, %p1473_p2  ;;  %p1134_p6 = scmp.lt.s32.totalorder %s1132_s30, %s1125_s12 }
  0x35   : > { %p1129_p12 = pneg %p1128_p3  ;;  %p1135_p5 = por %p1134_p6, %p1133_p11 }
  0x37   : > { %p1136_p7 = pnand %p1135_p5, %p1129_p12 }
  0x39   : > { %1139 = shalt.err (!%p1136_p7)
}
  0x3a   : > { %s1747_s26 = smov 128   ;;  %s1749_s16 = smov 8  }
  0x3b   : > { %1050 = dma.hbm_to_vmem [thread:$0]  (!%p1444_p13), %s1459_s17, 256, %s1462_s19, %s1467_s20, %s1747_s26, %s1747_s26, %s1749_s16  }
  0x3c   : > { %p334_p6 = scmp.lt.s32.totalorder %s1334_s24, 3  ;;  %s1773_s4 = sld [smem:[#allocation23_spill]] }
  0x3d   : > { %p1774_p9 = scmp.ge.s32.totalorder %s1334_s24, 1  ;;  %s298_s30 = scalar_lea.vmem [#allocation8], %s1450_s13 }
  0x3e   : > { %s305_s2 = sshll.u32 %s298_s30, 4  ;;  %s1776_s17 = sand.u32 1, %s1334_s24   ;;  %s1514_s2 = int_to_ptr.vmem [resolvable:$true] %s305_s2 }
  0x3f   : > { %p1509_p11 = pnand %p1774_p9, %p334_p6  ;;  %s1518_s19 = scalar_lea.sflag [#allocation9], %s1776_s17 }
  0x41   : > { %s1775_s15 = scalar_select %p1509_p11, 1, 0 }
  0x42   : > { %s1505_s29 = scalar_lea.hbm %s1773_s4, %s1453_s14  ;;  %s1145_s16 = scalar_lea.hbm %s1773_s4, 512 }
  0x43   : > { %s1140_s26 = scalar_lea.hbm %s1505_s29, 256  ;;  %p1146_p8 = scmp.lt.u32.totalorder %s1505_s29, %s1773_s4 }
  0x44   : > { %p1141_p12 = scmp.ne.s32.totalorder %s1505_s29, %s1140_s26  ;;  %p1147_p10 = scmp.lt.u32.totalorder %s1145_s16, %s1140_s26 }
  0x45   : > { %p1149_p3 = scmp.lt.u32.totalorder %s1140_s26, %s1505_s29 }
  0x46   : > { %p1143_p0 = pnand %p1141_p12, %p1473_p2  ;;  %p1148_p1 = por %p1147_p10, %p1146_p8 }
  0x48   : > { %p1144_p4 = pneg %p1143_p0  ;;  %p1150_p5 = por %p1149_p3, %p1148_p1 }
  0x4a   : > { %p1151_p7 = pnand %p1150_p5, %p1144_p4 }
  0x4c   : > { %1154 = shalt.err (!%p1151_p7)
}
  0x4d   : > { %s1155_s30 = scalar_lea.vmem %s1514_s2, 256  ;;  %s1339_s17 = smov [#allocation8]  }
  0x4e   : > { %p1156_p6 = scmp.ne.s32.totalorder %s1514_s2, %s1155_s30  ;;  %s1160_s12 = sshll.u32 %s1339_s17, 4  ;;  %s1161_s12 = int_to_ptr.vmem [resolvable:$false] %s1160_s12 }
  0x4f   : > { %s1162_s23 = scalar_lea.vmem %s1161_s12, 512  ;;  %p1163_p0 = scmp.lt.s32.totalorder %s1514_s2, %s1161_s12 }
  0x50   : > { %p1158_p9 = pnand %p1156_p6, %p1473_p2  ;;  %p1164_p11 = scmp.lt.s32.totalorder %s1162_s23, %s1155_s30 }
  0x52   : > { %p1159_p12 = pneg %p1158_p9  ;;  %p1165_p8 = por %p1164_p11, %p1163_p0 }
  0x54   : > { %p1166_p10 = pnand %p1165_p8, %p1159_p12 }
  0x56   : > { %1169 = shalt.err (!%p1166_p10)
}
  0x57   : > { %s1777_s27 = smov 8   ;;  %s1778_s26 = smov 128  }
  0x58   : > { %1056 = dma.hbm_to_vmem [thread:$0]  (!%p1444_p13), %s1505_s29, 256, %s1514_s2, %s1518_s19, %s1778_s26, %s1778_s26, %s1777_s27  }
  0x59   : > { %s949_s16 = sshll.u32 %s1442_s10, 1  ;;  %s950_s18 = sshll.u32 %s1334_s24, 5 }
  0x5a   : > { %s1550_s12 = scalar_lea.hbm %s1737_s0, %s950_s18  ;;  %s232_s23 = scalar_lea.vmem [#allocation2], %s949_s16 }
  0x5b   : > { %s239_s4 = sshll.u32 %s232_s23, 4  ;;  %s1558_s6 = scalar_lea.hbm %s1740_s3, %s1453_s14  ;;  %s1552_s4 = int_to_ptr.vmem [resolvable:$true] %s239_s4 }
  0x5c   : > { %s229_s2 = scalar_lea.sflag [#allocation3], %s1442_s10  ;;  %s1170_s29 = scalar_lea.hbm %s1550_s12, 32 }
  0x5d   : > { %p1171_p11 = scmp.ne.s32.totalorder %s1550_s12, %s1170_s29  ;;  %s1175_s17 = scalar_lea.hbm %s1737_s0, 64 }
  0x5e   : > { %p1176_p3 = scmp.lt.u32.totalorder %s1550_s12, %s1737_s0  ;;  %p1177_p5 = scmp.lt.u32.totalorder %s1175_s17, %s1170_s29 }
  0x5f   : > { %p1173_p4 = pnand %p1171_p11, %p1473_p2  ;;  %p1179_p6 = scmp.lt.u32.totalorder %s1170_s29, %s1550_s12 }
  0x60   : > { %p1178_p7 = por %p1177_p5, %p1176_p3 }
  0x61   : > { %p1174_p1 = pneg %p1173_p4 }
  0x62   : > { %p1180_p9 = por %p1179_p6, %p1178_p7 }
  0x64   : > { %p1181_p12 = pnand %p1180_p9, %p1174_p1 }
  0x66   : > { %1184 = shalt.err (!%p1181_p12)
}
  0x67   : > { %s1185_s21 = scalar_lea.vmem %s1552_s4, 32  ;;  %s1340_s9 = smov [#allocation2]  }
  0x68   : > { %p1186_p0 = scmp.ne.s32.totalorder %s1552_s4, %s1185_s21  ;;  %s1190_s10 = sshll.u32 %s1340_s9, 4  ;;  %s1191_s10 = int_to_ptr.vmem [resolvable:$false] %s1190_s10 }
  0x69   : > { %s1192_s24 = scalar_lea.vmem %s1191_s10, 64  ;;  %p1193_p11 = scmp.lt.s32.totalorder %s1552_s4, %s1191_s10 }
  0x6a   : > { %p1188_p8 = pnand %p1186_p0, %p1473_p2  ;;  %p1194_p4 = scmp.lt.s32.totalorder %s1192_s24, %s1185_s21 }
  0x6c   : > { %p1189_p10 = pneg %p1188_p8  ;;  %p1195_p3 = por %p1194_p4, %p1193_p11 }
  0x6e   : > { %p1196_p5 = pnand %p1195_p3, %p1189_p10 }
  0x70   : > { %1199 = shalt.err (!%p1196_p5)
}
  0x71   : > { %1047 = dma.hbm_to_vmem [thread:$0]  (!%p1444_p13), %s1550_s12, 32, %s1552_s4, %s229_s2  }
  0x72   : > { %s277_s23 = scalar_lea.vmem [#allocation7], %s1450_s13  ;;  %s1589_s17 = scalar_lea.hbm %s1742_s5, %s1453_s14 }
  0x73   : > { %s284_s29 = sshll.u32 %s277_s23, 4  ;;  %s1200_s16 = scalar_lea.hbm %s1558_s6, 256  ;;  %s1583_s29 = int_to_ptr.vmem [resolvable:$true] %s284_s29 }
  0x74   : > { %p1201_p1 = scmp.ne.s32.totalorder %s1558_s6, %s1200_s16  ;;  %s1205_s10 = scalar_lea.hbm %s1740_s3, 512 }
  0x75   : > { %p1206_p9 = scmp.lt.u32.totalorder %s1558_s6, %s1740_s3  ;;  %p1207_p12 = scmp.lt.u32.totalorder %s1205_s10, %s1200_s16 }
  0x76   : > { %p1203_p7 = pnand %p1201_p1, %p1473_p2  ;;  %p1209_p8 = scmp.lt.u32.totalorder %s1200_s16, %s1558_s6 }
  0x77   : > { %p1208_p0 = por %p1207_p12, %p1206_p9 }
  0x78   : > { %p1204_p6 = pneg %p1203_p7 }
  0x79   : > { %p1210_p10 = por %p1209_p8, %p1208_p0 }
  0x7b   : > { %p1211_p11 = pnand %p1210_p10, %p1204_p6 }
  0x7d   : > { %1214 = shalt.err (!%p1211_p11)
}
  0x7e   : > { %s1215_s14 = scalar_lea.vmem %s1583_s29, 256  ;;  %s1341_s12 = smov [#allocation7]  }
  0x7f   : > { %p1216_p4 = scmp.ne.s32.totalorder %s1583_s29, %s1215_s14  ;;  %s1220_s2 = sshll.u32 %s1341_s12, 4  ;;  %s1221_s2 = int_to_ptr.vmem [resolvable:$false] %s1220_s2 }
  0x80   : > { %s1222_s23 = scalar_lea.vmem %s1221_s2, 512  ;;  %p1223_p1 = scmp.lt.s32.totalorder %s1583_s29, %s1221_s2 }
  0x81   : > { %p1218_p3 = pnand %p1216_p4, %p1473_p2  ;;  %p1224_p7 = scmp.lt.s32.totalorder %s1222_s23, %s1215_s14 }
  0x83   : > { %p1219_p5 = pneg %p1218_p3  ;;  %p1225_p9 = por %p1224_p7, %p1223_p1 }
  0x85   : > { %p1226_p12 = pnand %p1225_p9, %p1219_p5 }
  0x87   : > { %1229 = shalt.err (!%p1226_p12)
}
  0x88   : > { %1053 = dma.hbm_to_vmem [thread:$0]  (!%p1444_p13), %s1558_s6, 256, %s1583_s29, %s1467_s20, %s1778_s26, %s1778_s26, %s1777_s27  }
  0x89   : > { %s319_s18 = scalar_lea.vmem [#allocation10], %s1450_s13  ;;  %s1230_s16 = scalar_lea.hbm %s1589_s17, 256 }
  0x8a   : > { %s326_s30 = sshll.u32 %s319_s18, 4  ;;  %p1231_p6 = scmp.ne.s32.totalorder %s1589_s17, %s1230_s16  ;;  %s1617_s30 = int_to_ptr.vmem [resolvable:$true] %s326_s30 }
  0x8b   : > { %s1235_s10 = scalar_lea.hbm %s1742_s5, 512  ;;  %p1236_p10 = scmp.lt.u32.totalorder %s1589_s17, %s1742_s5 }
  0x8c   : > { %p1233_p0 = pnand %p1231_p6, %p1473_p2  ;;  %p1237_p11 = scmp.lt.u32.totalorder %s1235_s10, %s1230_s16 }
  0x8d   : > { %p1239_p3 = scmp.lt.u32.totalorder %s1230_s16, %s1589_s17 }
  0x8e   : > { %p1234_p8 = pneg %p1233_p0  ;;  %p1238_p4 = por %p1237_p11, %p1236_p10 }
  0x90   : > { %p1240_p5 = por %p1239_p3, %p1238_p4 }
  0x92   : > { %p1241_p1 = pnand %p1240_p5, %p1234_p8 }
  0x94   : > { %1244 = shalt.err (!%p1241_p1)
}
  0x95   : > { %s1245_s6 = scalar_lea.vmem %s1617_s30, 256  ;;  %s1342_s13 = smov [#allocation10]  }
  0x96   : > { %p1246_p7 = scmp.ne.s32.totalorder %s1617_s30, %s1245_s6  ;;  %s1250_s20 = sshll.u32 %s1342_s13, 4  ;;  %s1251_s20 = int_to_ptr.vmem [resolvable:$false] %s1250_s20 }
  0x97   : > { %s1252_s29 = scalar_lea.vmem %s1251_s20, 512  ;;  %p1253_p6 = scmp.lt.s32.totalorder %s1617_s30, %s1251_s20 }
  0x98   : > { %p1248_p9 = pnand %p1246_p7, %p1473_p2  ;;  %p1254_p0 = scmp.lt.s32.totalorder %s1252_s29, %s1245_s6 }
  0x9a   : > { %p1249_p12 = pneg %p1248_p9  ;;  %p1255_p10 = por %p1254_p0, %p1253_p6 }
  0x9c   : > { %p1256_p11 = pnand %p1255_p10, %p1249_p12 }
  0x9e   : > { %1259 = shalt.err (!%p1256_p11)
}
  0x9f   : > { %1059 = dma.hbm_to_vmem [thread:$0]  (!%p1444_p13), %s1589_s17, 256, %s1617_s30, %s1518_s19, %s1778_s26, %s1778_s26, %s1777_s27  }
  0xa0   : > { %p1779_p2 = scmp.ne.s32.totalorder %s1775_s15, 0 }
  0xa1   : > { %s1647_s28 = sand.u32 (!%p1779_p2), 1, %s1326_s22   ;;  %p1780_p8 = scmp.ne.s32.totalorder (!%p1779_p2), %s1766_s7, 0 }
  0xa2   : > { %338 = sbr.rel (%p1779_p2) target bundleno = 536 (0x218), region = 44  ;;  %s964_s14 = sshll.u32 (!%p1779_p2), %s1647_s28, 1 }
  0xa3   : > { %s341_s12 = scalar_lea.sflag (!%p1779_p2), [#allocation3], %s1647_s28  ;;  %s1651_s2 = scalar_lea.vmem (!%p1779_p2), [#allocation2], %s964_s14 }
  0xa9   : > { %1305 = dma.done.wait (%p1780_p8), %s341_s12, 32  }
  0xaa   : > { %1307 = vsyncadd (%p1780_p8), %s341_s12, 4294967264  ;;  %s349_s11 = sand.u32 1, %s1408_s25   ;;  %s1659_s15 = sshll.u32 %s1647_s28, 4 }
  0xab   : > { %s350_s19 = scalar_lea.sflag [#allocation6], %s349_s11  ;;  %s353_s27 = scalar_lea.vmem [#allocation5], %s1659_s15 }
  0xac   : > { %1309 = dma.done.wait (%p1780_p8), %s350_s19, 512  }
  0xad   : > { %1311 = vsyncadd (%p1780_p8), %s350_s19, 4294966784  ;;  %s362_s26 = scalar_lea.vmem [#allocation7], %s1659_s15  ;;  %s368_s17 = scalar_lea.sflag [#allocation9], %s349_s11 }
  0xae   : > { %s371_s23 = scalar_lea.vmem [#allocation8], %s1659_s15 }
  0xaf   : > { %1313 = dma.done.wait (%p1780_p8), %s368_s17, 512  }
  0xb0   : > { %1315 = vsyncadd (%p1780_p8), %s368_s17, 4294966784  ;;  %v1343_v0 = vmov 0.0|0.0   ;;  %p431_p13 = scmp.lt.s32.totalorder %s1408_s25, 1  ;;  %vm1344_vm0 = vmmov 0   ;;  %v1345_v1 = vmov 0.0   ;;  %v1346_v2 = vmov 0  }
  0xb1   : > { %1020 = vmatprep.subr.bf16.mxu0 %v1343_v0  ;;  %1023 = vmatprep.subr.bf16.mxu1 %v1343_v0  ;;  %v437_v3 = vld [vmem:[%s353_s27] sm:$0xff]  ;;  %v438_v4 = vld [vmem:[%s353_s27 + $0x8] sm:$0xff]  ;;  %s380_s21 = scalar_lea.vmem [#allocation10], %s1659_s15  ;;  %vm439_vm1 = vcmask 130048   ;;  %v1347_v18 = vmov 1   ;;  %v737_v19 = vlaneseq  ;;  %s1348_s9 = smov 32  }
  0xb2   : > { %996 = vmatprep.mubr.msk.f32.mxu0 %vm1344_vm0, %v1345_v1  ;;  %1003 = vmatprep.mubr.msk.f32.mxu1 %vm1344_vm0, %v1345_v1  ;;  %s432_s18 = scalar_select %p431_p13, %s1408_s25, 1  ;;  %v513_v5 = vld [vmem:[%s362_s26] sm:$0xff]  ;;  %v1021_v6 = vpack.c.bf16 %v438_v4, %v437_v3  ;;  %v514_v7 = vld [vmem:[%s362_s26 + $0x8] sm:$0xff]  ;;  %vm765_vm2 = vcmask 261120   ;;  %vm767_vm3 = vcmask 523264   ;;  %vm769_vm4 = vcmask 785408  }
  0xb3   : > { %1108 = vset.pattern.permute.xlu0 %v1346_v2  ;;  %v585_v8 = vld [vmem:[%s371_s23] sm:$0xff]  ;;  %v1024_v9 = vpack.c.bf16 %v514_v7, %v513_v5  ;;  %v586_v10 = vld [vmem:[%s371_s23 + $0x8] sm:$0xff]  ;;  %v738_v20 = vshrl.u32 %v737_v19, 7  ;;  %s1349_s10 = smov 64   ;;  %s1350_s24 = smov 96  }
  0xb4   : > { %s433_s16 = scalar_lea.vmem %s1738_s1, %s432_s18  ;;  %v660_v11 = vld [vmem:[%s380_s21] sm:$0xff]  ;;  %v661_v12 = vld [vmem:[%s380_s21 + $0x8] sm:$0xff]  ;;  %1022 = vmatpush3.bf16.msra.mxu0 %v1021_v6  ;;  %v1027_v14 = vpack.c.bf16 %v586_v10, %v585_v8  ;;  %s973_s4 = sshll.u32 %s1408_s25, 4 }
  0xb5   : > { %v434_v13 = vld [vmem:[%s1651_s2] sm:$0x1]  ;;  %1025 = vmatpush3.bf16.msra.mxu1 %v1024_v9  ;;  %1026 = vmatprep.subr.bf16.mxu0 %v1343_v0  ;;  %v1030_v16 = vpack.c.bf16 %v661_v12, %v660_v11  ;;  %v435_v17 = vld [vmem:[%s1651_s2 + $0x1] sm:$0x1]  ;;  %v739_v22 = vsub.s32 0, %v738_v20  ;;  %s430_s6 = scalar_lea.vmem [#allocation11], %s1647_s28 }
  0xb6   : > { %v436_v15 = vld [vmem:[%s433_s16] sm:$0x1]  ;;  %1029 = vmatprep.subr.bf16.mxu1 %v1343_v0  ;;  %s785_s13 = sshll.u32 %s430_s6, 4  ;;  %s1781_s14 = sld [smem:[#allocation24_spill]]  ;;  %s1695_s13 = int_to_ptr.vmem [resolvable:$true] %s785_s13 }
  0xb7   : > { %734 = vperm.xlu0 %1108, %v436_v15   ;;  %997 = vmatmul.mubr.msk.f32.vlgmr.msra.gmra.mrb[0].mxu0 %vm439_vm1, %v434_v13  ;;  %s773_s2 = scalar_lea.sflag [#allocation4], %s1647_s28  ;;  %s1260_s25 = scalar_lea.vmem %s1695_s13, 16 }
  0xb8   : > { %1004 = vmatmul.mubr.msk.f32.vlgmr.msra.gmra.mrb[0].mxu1 %vm439_vm1, %v434_v13  ;;  %1028 = vmatpush3.bf16.msra.mxu0 %v1027_v14  ;;  %p1261_p4 = scmp.ne.s32.totalorder %s1695_s13, %s1260_s25  ;;  %p1782_p3 = scmp.ne.s32.totalorder %s1767_s8, 0 }
  0xb9   : > { %1031 = vmatpush3.bf16.msra.mxu1 %v1030_v16  ;;  %1010 = vmatprep.mubr.msk.f32.mxu0 %vm1344_vm0, %v1345_v1  ;;  %s1351_s11 = smov [#allocation11]  }
  0xba   : > { %1017 = vmatprep.mubr.msk.f32.mxu1 %vm1344_vm0, %v1345_v1  ;;  %p1262_p5 = pnand %p1261_p4, %p1782_p3  ;;  %s1264_s15 = sshll.u32 %s1351_s11, 4  ;;  %s1265_s15 = int_to_ptr.vmem [resolvable:$false] %s1264_s15 }
  0xbb   : > { %1109 = vset.pattern.permute.xlu0 %v1347_v18  ;;  %1011 = vmatmul.mubr.msk.f32.vlgmr.msra.gmra.mrb[2].mxu0 %vm439_vm1, %v435_v17  ;;  %s1266_s19 = scalar_lea.vmem %s1265_s15, 32  ;;  %p1267_p7 = scmp.lt.s32.totalorder %s1695_s13, %s1265_s15 }
  0xbc   : > { %744 = vperm.xlu0 %1109, %v436_v15   ;;  %1018 = vmatmul.mubr.msk.f32.vlgmr.msra.gmra.mrb[2].mxu1 %vm439_vm1, %v435_v17  ;;  %s1693_s12 = scalar_lea.hbm %s1781_s14, %s973_s4  ;;  %p1263_p1 = pneg %p1262_p5 }
  0xbd   : > { %p1268_p9 = scmp.lt.s32.totalorder %s1266_s19, %s1260_s25 }
  0xbf   : > { %p1269_p12 = por %p1268_p9, %p1267_p7 }
  0xc1   : > { %p1270_p6 = pnand %p1269_p12, %p1263_p1 }
 0x136   : > { %v735_v21 = vpop.permute.xlu0 %734 }
 0x137   : > { %v740_v23 = vrot.slane %v735_v21, %v739_v22 }
 0x13b   : > { %v745_v24 = vpop.permute.xlu0 %744 }
 0x13c   : > { %v750_v29 = vrot.slane %v745_v24, %v739_v22 }
 0x18a   : > { %v509_v25 = vpop.f32.mrb[0].mxu0 }
 0x18b   : > { %v741_v26 = vmul.f32 %v740_v23, %v509_v25  ;;  %v581_v27 = vpop.f32.mrb[0].mxu1  ;;  %v998_v28 = vpop.f32.mrb[1].mxu0 }
 0x18c   : > { %v742_v30 = vmul.f32 %v740_v23, %v581_v27  ;;  %v1005_v31 = vpop.f32.mrb[1].mxu1 }
 0x18e   : > { %754 = vrot.lane.b32.xlu1 %v742_v30, %s1348_s9  ;;  %v656_v32 = vpop.f32.mrb[2].mxu0 }
 0x18f   : > { %v751_v33 = vmul.f32 %v750_v29, %v656_v32  ;;  %v1012_v34 = vpop.f32.mrb[3].mxu0  ;;  %v728_v35 = vpop.f32.mrb[2].mxu1 }
 0x190   : > { %v1019_v36 = vpop.f32.mrb[3].mxu1  ;;  %v752_v37 = vmul.f32 %v750_v29, %v728_v35 }
 0x192   : > { %758 = vrot.lane.b32.xlu1 %v751_v33, %s1349_s10 }
 0x196   : > { %762 = vrot.lane.b32.xlu1 %v752_v37, %s1350_s24 }
 0x200   : > { %v755_v38 = vpop.permute.xlu1 %754 }
 0x201   : > { %v766_v40 = vsel %vm765_vm2, %v741_v26, %v755_v38 }
 0x204   : > { %v759_v39 = vpop.permute.xlu1 %758 }
 0x205   : > { %v768_v41 = vsel %vm767_vm3, %v766_v40, %v759_v39 }
 0x208   : > { %v763_v42 = vpop.permute.xlu1 %762 }
 0x209   : > { %v770_v43 = vsel %vm769_vm4, %v768_v41, %v763_v42 }
 0x20a   : > { %771 = vst [vmem:[%s430_s6] sm:$0x1] %v770_v43 }
 0x20b   : > { %1273 = shalt.err (!%p1270_p6)
}
 0x20c   : > { %s1274_s28 = scalar_lea.hbm %s1693_s12, 16  ;;  %s1278_s17 = scalar_lea.hbm %s1781_s14, 32 }
 0x20d   : > { %p1275_p0 = scmp.ne.s32.totalorder %s1693_s12, %s1274_s28  ;;  %p1279_p2 = scmp.lt.u32.totalorder %s1693_s12, %s1781_s14 }
 0x20e   : > { %p1280_p8 = scmp.lt.u32.totalorder %s1278_s17, %s1274_s28  ;;  %p1282_p4 = scmp.lt.u32.totalorder %s1274_s28, %s1693_s12 }
 0x20f   : > { %p1276_p10 = pnand %p1275_p0, %p1782_p3 }
 0x210   : > { %p1281_p13 = por %p1280_p8, %p1279_p2 }
 0x211   : > { %p1277_p11 = pneg %p1276_p10 }
 0x212   : > { %p1283_p5 = por %p1282_p4, %p1281_p13 }
 0x214   : > { %p1284_p1 = pnand %p1283_p5, %p1277_p11 }
 0x216   : > { %1287 = shalt.err (!%p1284_p1)
}
 0x217   : > { %1042 = dma.vmem_to_hbm [thread:$0]  (%p1782_p3), %s1695_s13, 16, %s1693_s12, %s773_s2  }
 0x218 PF: > { %s1783_s7 = sld [smem:[#allocation16_spill]]  ;;  %s1784_s30 = sld [smem:[#allocation21_spill]] }
 0x219   : > { %s1785_s16 = sld [smem:[#allocation18_spill]] }
 0x21e   : > { %s797_s21 = sand.u32 1, %s1783_s7   ;;  %p1786_p7 = scmp.ne.s32.totalorder %s1784_s30, 0 }
 0x21f   : > { %p1787_p9 = scmp.ge.s32.totalorder %s1785_s16, 2  ;;  %s798_s9 = scalar_lea.sflag [#allocation4], %s797_s21 }
 0x221   : > { %p1061_p12 = pnand %p1787_p9, %p1786_p7 }
 0x223   : > { %1317 = dma.done.wait (!%p1061_p12), %s798_s9, 16  }
 0x224   : > { %1319 = vsyncadd (!%p1061_p12), %s798_s9, 4294967280  ;;  %s1788_s24 = sld [smem:[#allocation19_spill]]  ;;  %s1789_s10 = sld [smem:[#allocation17_spill]] }
 0x225   : > { %s1790_s23 = sld [smem:[#allocation20_spill]]  ;;  %s1791_s21 = smov %s1326_s22 }
 0x22a   : > { %p25_p6 = scmp.ge.s32.totalorder %s1788_s24, 4   ;;  %s1792_s22 = smov %s1789_s10 }
 0x22c   :  { %27 = sbr.rel (!%p25_p6) target bundleno = 13 (0xd), region = 140 }
 0x233   :  { %802 = vsyncpa [#allocation3], 1 }
 0x234   :  { %804 = vsyncpa [#allocation3 + $0x1], 1 }
 0x235   :  { %805 = vsyncpa [#allocation6], 1 }
 0x236   :  { %807 = vsyncpa [#allocation6 + $0x1], 1 }
 0x237   :  { %808 = vsyncpa [#allocation9], 1 }
 0x238   :  { %810 = vsyncpa [#allocation9 + $0x1], 1 }
 0x239   :  { %811 = vsyncpa [#allocation4], 1 }
 0x23a   :  { %813 = vsyncpa [#allocation4 + $0x1], 1 }

</bundles_post_ra>
